<compile_context>
chip_gen: v6e
topology: v6e:2x2x1
jax: 0.10.0
libtpu: 0.0.40
codegen_flags: <defaults>
</compile_context>

<pallas_src>
import jax
import jax.numpy as jnp
from jax.experimental import pallas as pl
from jax.experimental.pallas import tpu as pltpu


def _mean_pool_kernel(x_ref, b_ref, inv_ref, o_ref, sum_acc):
    step = pl.program_id(1)            # node-tile (reduction) axis

    @pl.when(step == 0)
    def _():
        sum_acc[...] = jnp.zeros_like(sum_acc)

    x = x_ref[...]                     # [tile_n, tile_d]
    gids = b_ref[...]                  # [1, tile_n] int32 graph ids (lane-dense)
    num_graphs = sum_acc.shape[0]
    tile_n = x.shape[0]

    # One-hot membership in MXU-natural orientation [num_graphs, tile_n]:
    # LHS last dim == RHS first dim == tile_n, so no operand transpose is
    # needed.  Padded / out-of-range rows (gid == num_graphs) match no row.
    graph_iota = jax.lax.broadcasted_iota(jnp.int32, (num_graphs, tile_n), 0)
    onehot = (gids == graph_iota).astype(x.dtype)          # [G, tile_n]

    # Segment-sum on the MXU, accumulated in f32.
    sum_acc[...] += jnp.dot(onehot, x, preferred_element_type=jnp.float32)

    @pl.when(step == pl.num_programs(1) - 1)
    def _():
        # inv_ref holds 1/max(count, 1) per graph (empty graphs -> 0, as PyG).
        o_ref[...] = (sum_acc[...] * inv_ref[...]).astype(o_ref.dtype)


def global_mean_pool(x: jax.Array, batch: jax.Array, num_graphs: int) -> jax.Array:
    """Per-graph mean pooling of node features (PyG global_mean_pool).

    `num_graphs` must be a static Python int >= max(batch) + 1 (no implicit
    device sync / host round-trip is performed to infer it).
    """
    n, d = x.shape
    itemsize = jnp.dtype(x.dtype).itemsize

    # --- per-graph inverse counts, computed once with plain XLA -------------
    batch_i32 = batch.astype(jnp.int32)
    counts = jax.ops.segment_sum(
        jnp.ones((n,), jnp.float32), batch_i32, num_segments=num_graphs)
    inv = (1.0 / jnp.maximum(counts, 1.0)).reshape(num_graphs, 1)

    # --- feature-axis split (only when strips stay >= 256 wide) -------------
    tile_d = d
    if d >= 512 and d % 256 == 0:
        tile_d = d // 2            # 2 feature blocks -> v7x megacore parallel axis

    # --- node-tile sizing: budget x tile + one-hot temporary + gid row ------
    bytes_per_row = tile_d * itemsize + num_graphs * 4 + 4
    budget = 8 * 1024 * 1024                      # per-tile working set target
    tile_n = budget // max(1, bytes_per_row)
    tile_n = (tile_n // 128) * 128                # lane-dense gid row blocks
    tile_n = max(128, min(tile_n, 32768, pl.cdiv(n, 128) * 128))

    n_pad = pl.cdiv(n, tile_n) * tile_n
    if n_pad != n:
        x = jnp.pad(x, ((0, n_pad - n), (0, 0)))
        # Padded nodes get graph id == num_graphs -> match no one-hot row.
        batch_i32 = jnp.pad(batch_i32, (0, n_pad - n), constant_values=num_graphs)
    batch_row = batch_i32.reshape(1, n_pad)       # lane-dense row vector

    grid = (d // tile_d, n_pad // tile_n)

    return pl.pallas_call(
        _mean_pool_kernel,
        out_shape=jax.ShapeDtypeStruct((num_graphs, d), x.dtype),
        grid_spec=pltpu.PrefetchScalarGridSpec(
            num_scalar_prefetch=0,
            grid=grid,
            in_specs=[
                pl.BlockSpec((tile_n, tile_d), lambda j, i: (i, j)),   # node features
                pl.BlockSpec((1, tile_n), lambda j, i: (0, i)),        # graph ids row
                pl.BlockSpec((num_graphs, 1), lambda j, i: (0, 0)),    # 1/count
            ],
            out_specs=pl.BlockSpec((num_graphs, tile_d), lambda j, i: (0, j)),
            scratch_shapes=[
                pltpu.VMEM((num_graphs, tile_d), jnp.float32),         # per-graph sums
            ],
        ),
        compiler_params=pltpu.CompilerParams(
            # feature axis: independent (megacore on v7x); node axis: reduction.
            dimension_semantics=("parallel", "arbitrary"),
            # Generous but v7x-safe (64 MiB physical); actual usage is ~2-3x
            # the 8 MiB per-tile budget.
            vmem_limit_bytes=48 * 1024 * 1024,
        ),
        cost_estimate=pl.CostEstimate(
            flops=2 * n_pad * num_graphs * d,
            transcendentals=0,
            bytes_accessed=n_pad * d * itemsize
                           + n_pad * 4 * (d // tile_d)
                           + num_graphs * d * itemsize
                           + num_graphs * 4,
        ),
    )(x, batch_row, inv)


if __name__ == "__main__":
    key = jax.random.PRNGKey(0)
    kx, _ = jax.random.split(key)

    num_nodes, hidden, num_graphs = 16, 32, 2
    x = jax.random.normal(kx, (num_nodes, hidden), dtype=jnp.float32)
    # Batch assignment vector: first half of the nodes -> graph 0, rest -> graph 1.
    batch = jnp.repeat(jnp.arange(num_graphs, dtype=jnp.int32),
                       num_nodes // num_graphs)

    out = global_mean_pool(x, batch, num_graphs=num_graphs)
    jax.block_until_ready(out)

    # Reference: segment-sum / segment-count.
    seg_sum = jax.ops.segment_sum(x, batch, num_segments=num_graphs)
    seg_cnt = jax.ops.segment_sum(jnp.ones((num_nodes,), jnp.float32), batch,
                                  num_segments=num_graphs)
    expected = seg_sum / jnp.maximum(seg_cnt, 1.0)[:, None]

    assert out.shape == (num_graphs, hidden) and out.dtype == x.dtype
    assert jnp.allclose(out, expected, atol=1e-5, rtol=1e-5), (out, expected)
    print("KERNEL_OK")
</pallas_src>

<mosaic_0001>
module attributes {stable_mosaic.version = 11 : i64} {
  func.func @_mean_pool_kernel(%arg0: i32, %arg1: i32, %arg2: memref<128x32xf32, #tpu.memory_space<vmem>>, %arg3: memref<1x128xi32, #tpu.memory_space<vmem>>, %arg4: memref<2x1xf32, #tpu.memory_space<vmem>>, %arg5: memref<2x32xf32, #tpu.memory_space<vmem>>, %arg6: memref<2x32xf32, #tpu.memory_space<vmem>>) attributes {dimension_semantics = [#tpu.dimension_semantics<parallel>, #tpu.dimension_semantics<arbitrary>], iteration_bounds = array<i64: 1, 1>, scalar_prefetch = 0 : i64, scratch_operands = 1 : i64, tpu.core_type = #tpu.core_type<tc>, window_params = [{transform_indices = @transform_0, window_bounds = array<i64: 128, 32>}, {transform_indices = @transform_1, window_bounds = array<i64: 1, 128>}, {pipeline_mode = #tpu.pipeline_mode<synchronous>, transform_indices = @transform_2, window_bounds = array<i64: 2, 1>}, {transform_indices = @transform_3, window_bounds = array<i64: 2, 32>}]} {
    %c0_i32 = arith.constant 0 : i32
    %0 = arith.cmpi eq, %arg1, %c0_i32 : i32
    %1 = arith.extui %0 : i1 to i32
    %c0_i32_0 = arith.constant 0 : i32
    %2 = arith.cmpi ne, %1, %c0_i32_0 : i32
    scf.if %2 {
      %cst_10 = arith.constant 0.000000e+00 : f32
      %17 = vector.broadcast %cst_10 : f32 to vector<2x32xf32>
      %c0_11 = arith.constant 0 : index
      %c0_12 = arith.constant 0 : index
      %18 = vector.load %arg6[%c0_11, %c0_12] : memref<2x32xf32, #tpu.memory_space<vmem>>, vector<2x32xf32>
      tpu.vector_store %arg6[%c0_11, %c0_12], %17 {strides = array<i32>} : memref<2x32xf32, #tpu.memory_space<vmem>>, vector<2x32xf32>,
    } else {
    }
    %c0 = arith.constant 0 : index
    %c0_1 = arith.constant 0 : index
    %3 = vector.load %arg2[%c0, %c0_1] : memref<128x32xf32, #tpu.memory_space<vmem>>, vector<128x32xf32>
    %c0_2 = arith.constant 0 : index
    %c0_3 = arith.constant 0 : index
    %4 = vector.load %arg3[%c0_2, %c0_3] : memref<1x128xi32, #tpu.memory_space<vmem>>, vector<1x128xi32>
    %5 = tpu.iota {dimensions = array<i32: 0>} : vector<2x128xi32>
    %6 = vector.broadcast %4 : vector<1x128xi32> to vector<2x128xi32>
    %7 = arith.cmpi eq, %6, %5 : vector<2x128xi32>
    %8 = arith.extui %7 : vector<2x128xi1> to vector<2x128xi32>
    %9 = arith.sitofp %8 : vector<2x128xi32> to vector<2x128xf32>
    %c0_4 = arith.constant 0 : index
    %c0_5 = arith.constant 0 : index
    %10 = vector.load %arg6[%c0_4, %c0_5] : memref<2x32xf32, #tpu.memory_space<vmem>>, vector<2x32xf32>
    %cst = arith.constant dense<0.000000e+00> : vector<2x32xf32>
    %11 = tpu.matmul %9, %3, %cst {dimension_numbers = #tpu.dot_dimension_numbers<[1], [0], [0], [1], [0, 0, 1, 1], [], []>} : vector<2x128xf32>, vector<128x32xf32>, vector<2x32xf32> -> vector<2x32xf32>
    %12 = arith.addf %10, %11 : vector<2x32xf32>
    %c0_6 = arith.constant 0 : index
    %c0_7 = arith.constant 0 : index
    %13 = vector.load %arg6[%c0_6, %c0_7] : memref<2x32xf32, #tpu.memory_space<vmem>>, vector<2x32xf32>
    tpu.vector_store %arg6[%c0_6, %c0_7], %12 {strides = array<i32>} : memref<2x32xf32, #tpu.memory_space<vmem>>, vector<2x32xf32>,
    %c0_i32_8 = arith.constant 0 : i32
    %14 = arith.cmpi eq, %arg1, %c0_i32_8 : i32
    %15 = arith.extui %14 : i1 to i32
    %c0_i32_9 = arith.constant 0 : i32
    %16 = arith.cmpi ne, %15, %c0_i32_9 : i32
    scf.if %16 {
      %c0_10 = arith.constant 0 : index
      %c0_11 = arith.constant 0 : index
      %17 = vector.load %arg6[%c0_10, %c0_11] : memref<2x32xf32, #tpu.memory_space<vmem>>, vector<2x32xf32>
      %c0_12 = arith.constant 0 : index
      %c0_13 = arith.constant 0 : index
      %18 = vector.load %arg4[%c0_12, %c0_13] : memref<2x1xf32, #tpu.memory_space<vmem>>, vector<2x1xf32>
      %19 = vector.broadcast %18 : vector<2x1xf32> to vector<2x32xf32>
      %20 = arith.mulf %17, %19 : vector<2x32xf32>
      %c0_14 = arith.constant 0 : index
      %c0_15 = arith.constant 0 : index
      %21 = vector.load %arg5[%c0_14, %c0_15] : memref<2x32xf32, #tpu.memory_space<vmem>>, vector<2x32xf32>
      tpu.vector_store %arg5[%c0_14, %c0_15], %20 {strides = array<i32>} : memref<2x32xf32, #tpu.memory_space<vmem>>, vector<2x32xf32>,
    } else {
    }
    return
  }
  func.func @transform_0(%arg0: i32, %arg1: i32) -> (i32, i32) {
    %c0_i32 = arith.constant 0 : i32
    return %arg1, %arg0 : i32, i32
  }
  func.func @transform_1(%arg0: i32, %arg1: i32) -> (i32, i32) {
    %c0_i32 = arith.constant 0 : i32
    %c0_i32_0 = arith.constant 0 : i32
    return %c0_i32, %arg1 : i32, i32
  }
  func.func @transform_2(%arg0: i32, %arg1: i32) -> (i32, i32) {
    %c0_i32 = arith.constant 0 : i32
    %c0_i32_0 = arith.constant 0 : i32
    %c0_i32_1 = arith.constant 0 : i32
    return %c0_i32, %c0_i32_0 : i32, i32
  }
  func.func @transform_3(%arg0: i32, %arg1: i32) -> (i32, i32) {
    %c0_i32 = arith.constant 0 : i32
    %c0_i32_0 = arith.constant 0 : i32
    return %c0_i32, %arg0 : i32, i32
  }
}

</mosaic_0001>

<bundles_post_ra>
// kernel: tpu_custom_call.1
= control target key start
LH: loop header
LB: loop body
LE: loop exit
PB: predicated region body
PF: predicated region fallthrough
CT: control target
= control target key end

     0   :  { %v230_v1 = vmov 0.0   ;;  %vm231_vm0 = vmmov 0   ;;  %vm19_vm1 = vcmask 254976   ;;  %v232_v3 = vmov 0   ;;  %s315_s0 = inlined_call_operand.vmem [shape: f32[128,32], index: 0, kind: input, shape index: {}]   ;;  %s316_s1 = inlined_call_operand.vmem [shape: s32[1,128], index: 1, kind: input, shape index: {}]   ;;  %s317_s2 = inlined_call_operand.vmem [shape: f32[2,1], index: 2, kind: input, shape index: {}]   ;;  %s318_s3 = inlined_call_operand.hbm [shape: f32[2,32], index: 3, kind: output, shape index: {}]  }
   0x1   :  { %v36_v0 = vld [vmem:[%s315_s0 + $0x78] sm:$0xff]  ;;  %167 = vmatprep.subr.mxu0 %v230_v1  ;;  %v35_v2 = vld [vmem:[%s315_s0 + $0x70] sm:$0xff]  ;;  %199 = vmatprep.mubr.msk.f32.mxu0 %vm231_vm0, %v230_v1  ;;  %20 = vst.msk [vmem:[#allocation2] sm:$0x3] %vm19_vm1, %v230_v1  ;;  %v34_v4 = vld [vmem:[%s315_s0 + $0x68] sm:$0xff] }
   0x2   :  { %168 = vmatpush3.msra.mxu0 %v36_v0  ;;  %207 = vset.pattern.permute.xlu0 %v232_v3  ;;  %v33_v5 = vld [vmem:[%s315_s0 + $0x60] sm:$0xff] }
   0x3   :  { %169 = vmatprep.subr.mxu0 %v230_v1  ;;  %v125_v6 = vld [vmem:[%s317_s2] sm:$0x3] }
   0x4   :  { %170 = vmatpush3.msra.mxu0 %v35_v2  ;;  %128 = vperm.xlu0 %207, %v125_v6  }
   0x5   :  { %171 = vmatprep.subr.mxu0 %v230_v1 }
   0x6   :  { %172 = vmatpush3.msra.mxu0 %v34_v4 }
   0x7   :  { %8 = vsyncpa [#allocation4], 0  ;;  %173 = vmatprep.subr.mxu0 %v230_v1  ;;  %v32_v7 = vld [vmem:[%s315_s0 + $0x58] sm:$0xff]  ;;  %v31_v8 = vld [vmem:[%s315_s0 + $0x50] sm:$0xff]  ;;  %v38_v15 = vlaneseq  ;;  %v233_v22 = vmov 1.0  }
   0x8   :  { %174 = vmatpush3.msra.mxu0 %v33_v5  ;;  %v30_v9 = vld [vmem:[%s315_s0 + $0x48] sm:$0xff]  ;;  %v29_v10 = vld [vmem:[%s315_s0 + $0x40] sm:$0xff]  ;;  %v28_v11 = vld [vmem:[%s315_s0 + $0x38] sm:$0xff] }
   0x9   :  { %175 = vmatprep.subr.mxu0 %v230_v1  ;;  %v27_v12 = vld [vmem:[%s315_s0 + $0x30] sm:$0xff]  ;;  %v26_v13 = vld [vmem:[%s315_s0 + $0x28] sm:$0xff]  ;;  %v25_v14 = vld [vmem:[%s315_s0 + $0x20] sm:$0xff]  ;;  %v39_v18 = vshrl.u32 %v38_v15, 7 }
   0xa   :  { %176 = vmatpush3.msra.mxu0 %v32_v7  ;;  %v24_v16 = vld [vmem:[%s315_s0 + $0x18] sm:$0xff]  ;;  %v23_v17 = vld [vmem:[%s315_s0 + $0x10] sm:$0xff]  ;;  %v22_v19 = vld [vmem:[%s315_s0 + $0x8] sm:$0xff] }
   0xb   :  { %177 = vmatprep.subr.mxu0 %v230_v1  ;;  %v147_v20 = vld [vmem:[%s316_s1] ss:$0 sm:$0xff]  ;;  %s234_s1 = smov [#allocation3]  }
   0xc   :  { %178 = vmatpush3.msra.mxu0 %v31_v8  ;;  %v21_v21 = vld [vmem:[%s315_s0] sm:$0xff]  ;;  %vm44_vm2 = vcmp.eq.s32.totalorder %v147_v20, %v39_v18  ;;  %s139_s20 = sshll.u32 %s234_s1, 4  ;;  %s140_s20 = int_to_ptr.vmem [resolvable:$true] %s139_s20 }
   0xd   :  { %179 = vmatprep.subr.mxu0 %v230_v1  ;;  %v47_v23 = vld [vmem:[#allocation2] sm:$0x3]  ;;  %s208_s0 = scalar_lea.vmem %s140_s20, 32  ;;  %p213_p1 = scmp.lt.s32.totalorder %s140_s20, %s140_s20 }
   0xe   :  { %180 = vmatpush3.msra.mxu0 %v30_v9  ;;  %p209_p0 = scmp.ne.s32.totalorder %s140_s20, %s208_s0  ;;  %p214_p2 = scmp.lt.s32.totalorder %s208_s0, %s208_s0 }
   0xf   :  { %181 = vmatprep.subr.mxu0 %v230_v1 }
  0x10   :  { %182 = vmatpush3.msra.mxu0 %v29_v10  ;;  %p215_p3 = por %p214_p2, %p213_p1 }
  0x11   :  { %183 = vmatprep.subr.mxu0 %v230_v1 }
  0x12   :  { %184 = vmatpush3.msra.mxu0 %v28_v11  ;;  %p216_p4 = pnand %p215_p3, %p209_p0 }
  0x13   :  { %185 = vmatprep.subr.mxu0 %v230_v1 }
  0x14   :  { %186 = vmatpush3.msra.mxu0 %v27_v12 }
  0x15   :  { %187 = vmatprep.subr.mxu0 %v230_v1 }
  0x16   :  { %188 = vmatpush3.msra.mxu0 %v26_v13 }
  0x17   :  { %189 = vmatprep.subr.mxu0 %v230_v1 }
  0x18   :  { %190 = vmatpush3.msra.mxu0 %v25_v14 }
  0x19   :  { %191 = vmatprep.subr.mxu0 %v230_v1 }
  0x1a   :  { %192 = vmatpush3.msra.mxu0 %v24_v16 }
  0x1b   :  { %193 = vmatprep.subr.mxu0 %v230_v1 }
  0x1c   :  { %194 = vmatpush3.msra.mxu0 %v23_v17 }
  0x1d   :  { %195 = vmatprep.subr.mxu0 %v230_v1 }
  0x1e   :  { %196 = vmatpush3.msra.mxu0 %v22_v19 }
  0x1f   :  { %197 = vmatprep.subr.mxu0 %v230_v1 }
  0x20   :  { %198 = vmatpush3.msra.mxu0 %v21_v21 }
  0x21   :  { %200 = vmatmul.mubr.msk.f32.vlgmr.msra.gmra.mxu0 %vm44_vm2, %v233_v22 }
  0x7f   :  { %v129_v27 = vpop.permute.xlu0 %128 }
  0xe1   :  { %v114_v24 = vpop.f32.mrf.mxu0 }
  0xe2   :  { %v118_v25 = vadd.f32 %v114_v24, %v47_v23 }
  0xe3   :  { %v201_v26 = vpop.f32.mrf.mxu0 }
  0xe4   :  { %120 = vst.msk [vmem:[#allocation2] sm:$0x3] %vm19_vm1, %v118_v25 }
  0xeb   :  { %v124_v28 = vld [vmem:[#allocation2] sm:$0x3] }
  0xec   :  { %v131_v29 = vmul.f32 %v129_v27, %v124_v28 }
  0xee   :  { %132 = vst.msk [vmem:[#allocation3] sm:$0x3] %vm19_vm1, %v131_v29 }
  0xef   :  { %219 = shalt.err (!%p216_p4)
}
  0xf0   :  { %142 = dma.vmem_to_hbm [thread:$0]  %s140_s20, 32, %s318_s3, [#allocation4]  }
  0xf1   :  { %228 = dma.done.wait [#allocation4], 32  }
  0xf2   :  { %229 = vsyncadd [#allocation4], 4294967264 }
  0xf3   :  { %146 = vsyncpa [#allocation4], 1 }

</bundles_post_ra>
